<compile_context>
chip_gen: v5e
topology: v5e:2x2
jax: 0.10.0
libtpu: 0.0.40
codegen_flags: <defaults>
</compile_context>

<pallas_src>
import functools

import jax
import jax.numpy as jnp
from jax import lax
from jax.experimental import pallas as pl
from jax.experimental.pallas import tpu as pltpu


# --------------------------------------------------------------------------
# Generation-aware VMEM budgeting.
# --------------------------------------------------------------------------

def _round_up(x: int, m: int) -> int:
    return ((x + m - 1) // m) * m


def _vmem_config():
    """Return (working-set budget, vmem_limit_bytes) for the current chip.

    128 MiB parts (v4/v5e/v6e): ~32 MiB double-buffered working set, 96 MiB limit.
    64 MiB parts (v7x):          ~16 MiB working set, 48 MiB limit.
    """
    cap = 64 << 20  # conservative default (v7x per-TC VMEM)
    try:
        info = pltpu.get_tpu_info()
        cap = int(getattr(info, "vmem_capacity_bytes", cap)) or cap
    except Exception:
        pass
    budget = min(cap // 4, 32 << 20)
    limit = min((cap * 3) // 4, 96 << 20)
    return budget, limit


# --------------------------------------------------------------------------
# Path 1: direct HBM -> HBM windowed DMA (no VMEM round trip).
# --------------------------------------------------------------------------

_MAX_INFLIGHT_DMAS = 8          # outstanding DMAs to hide issue/completion latency
_MIN_DMA_BYTES = 256 << 10      # below this, descriptor latency dominates


def _divisors(n: int):
    return [d for d in range(1, n + 1) if n % d == 0]


def _pick_dma_chunk(n, c, l_out, itemsize, *, target_steps, min_chunk_bytes):
    """Channel rows per DMA (must divide C exactly: manual DMAs have no mask)."""
    row_bytes = l_out * itemsize
    divs = _divisors(c)
    # Largest chunk that still yields enough in-flight steps and a big-enough DMA.
    for tc in reversed(divs):
        if n * (c // tc) >= target_steps and tc * row_bytes >= min_chunk_bytes:
            return tc
    # Otherwise: most steps subject to a big-enough per-DMA size.
    for tc in divs:
        if tc * row_bytes >= min_chunk_bytes:
            return tc
    return c


def _chomp_dma_kernel(x_hbm, o_hbm, sem, *, window, tc, kc, total, l_out):
    """Flat step s = b*kc + j copies x[b, j*tc:(j+1)*tc, :L_out] -> out[...]."""
    b = pl.program_id(0)
    j = pl.program_id(1)
    step = b * kc + j

    def dma(s):
        bb = s // kc
        jj = s % kc
        return pltpu.make_async_copy(
            # Source window reads only the kept prefix (skips the chomped tail).
            x_hbm.at[bb, pl.ds(jj * tc, tc), pl.ds(0, l_out)],
            o_hbm.at[bb, pl.ds(jj * tc, tc), :],
            sem.at[s % window],
        )

    dma(step).start()

    # Keep at most `window` DMAs outstanding: retire the oldest one.
    @pl.when(step >= window - 1)
    def _():
        dma(step - (window - 1)).wait()

    # Drain the remaining in-flight DMAs on the last step.
    @pl.when(step == total - 1)
    def _():
        for w in range(window - 1):
            dma(step - w).wait()


def chomp1d_dma(x: jax.Array, chomp_size: int, *,
                target_steps: int = 8,
                min_chunk_bytes: int = _MIN_DMA_BYTES) -> jax.Array:
    """Chomp1d via direct HBM->HBM DMA; best for large per-batch slabs."""
    n, c, l = x.shape
    l_out = l - chomp_size
    assert 0 < chomp_size < l
    itemsize = jnp.dtype(x.dtype).itemsize

    tc = _pick_dma_chunk(n, c, l_out, itemsize,
                         target_steps=target_steps,
                         min_chunk_bytes=min_chunk_bytes)
    kc = c // tc
    total = n * kc
    window = min(total, _MAX_INFLIGHT_DMAS)

    return pl.pallas_call(
        functools.partial(_chomp_dma_kernel, window=window, tc=tc, kc=kc,
                          total=total, l_out=l_out),
        out_shape=jax.ShapeDtypeStruct((n, c, l_out), x.dtype),
        grid_spec=pltpu.PrefetchScalarGridSpec(
            num_scalar_prefetch=0,
            grid=(n, kc),
            in_specs=[pl.BlockSpec(memory_space=pl.ANY)],   # raw HBM ref
            out_specs=pl.BlockSpec(memory_space=pl.ANY),    # raw HBM ref
            scratch_shapes=[pltpu.SemaphoreType.DMA((window,))],
        ),
        compiler_params=pltpu.CompilerParams(
            # Cross-step DMA windowing => steps are not independent.
            dimension_semantics=("arbitrary", "arbitrary"),
        ),
        cost_estimate=pl.CostEstimate(
            flops=0, transcendentals=0,
            bytes_accessed=2 * n * c * l_out * itemsize),
    )(x)


# --------------------------------------------------------------------------
# Path 2: BlockSpec-pipelined copy, (N*C, L) rows, bounded VMEM tiles.
# --------------------------------------------------------------------------

_SUBLANE_PACK = {1: 32, 2: 16, 4: 8, 8: 8}  # dtype-size -> sublane packing


def _choose_tiles(nc, l_out, itemsize, budget):
    """Pick (row_tile, time_tile). time_tile is a multiple of 128 so both the
    input (length L) and output (length L_out) BlockSpecs are lane-aligned and
    the chomped tail is (essentially) never read."""
    pack = _SUBLANE_PACK.get(itemsize, 8)
    lanes = _round_up(l_out, 128)
    per_row = 4 * lanes * itemsize          # in + out blocks, double buffered
    max_rows = max(budget // per_row, 1)
    if max_rows >= nc:
        return nc, lanes                    # whole problem in one block
    if max_rows >= pack:
        return int((max_rows // pack) * pack), lanes
    # Very long sequences: minimal sublane-packed row tile + 128-lane time tiles.
    tr = pack if nc >= pack else nc
    per_col = 4 * tr * itemsize
    tl = max(128, (budget // per_col) // 128 * 128)
    return tr, min(tl, lanes)


def _chomp_copy_kernel(x_ref, o_ref):
    # Blocks are identical shapes; straight copy, no in-kernel reslice.
    o_ref[...] = x_ref[...]


def chomp1d_blocked(x: jax.Array, chomp_size: int,
                    *, vmem_budget_bytes: int | None = None) -> jax.Array:
    """Chomp1d via the auto-pipelined BlockSpec path (portable)."""
    n, c, l = x.shape
    l_out = l - chomp_size
    assert 0 < chomp_size < l
    nc = n * c
    itemsize = jnp.dtype(x.dtype).itemsize

    budget, vmem_limit = _vmem_config()
    if vmem_budget_bytes is not None:
        budget = vmem_budget_bytes
    tr, tl = _choose_tiles(nc, l_out, itemsize, budget)

    # Collapse (N, C) -> rows: metadata-only for contiguous input; yields
    # bigger, lane-dense blocks and far fewer grid steps when C is small.
    x2 = x.reshape(nc, l)
    grid = (pl.cdiv(nc, tr), pl.cdiv(l_out, tl))

    out2 = pl.pallas_call(
        _chomp_copy_kernel,
        out_shape=jax.ShapeDtypeStruct((nc, l_out), x.dtype),
        grid_spec=pltpu.PrefetchScalarGridSpec(
            num_scalar_prefetch=0,
            grid=grid,
            # Same (tr, tl) block on both sides: only the kept prefix is DMA'd
            # (edge blocks are truncated on read / masked on write by Pallas).
            in_specs=[pl.BlockSpec((tr, tl), lambda i, k: (i, k))],
            out_specs=pl.BlockSpec((tr, tl), lambda i, k: (i, k)),
        ),
        compiler_params=pltpu.CompilerParams(
            # Pure copy, no cross-iteration deps: every axis may be sharded
            # across v7x's two TensorCores.
            dimension_semantics=("parallel", "parallel"),
            # Generation-aware: 96 MiB on 128 MiB parts, 48 MiB on v7x.
            vmem_limit_bytes=int(vmem_limit),
        ),
        cost_estimate=pl.CostEstimate(
            flops=0, transcendentals=0,
            bytes_accessed=2 * nc * l_out * itemsize),
    )(x2)
    return out2.reshape(n, c, l_out)


# --------------------------------------------------------------------------
# Dispatcher (module-level forward).
# --------------------------------------------------------------------------

def chomp1d(x: jax.Array, chomp_size: int) -> jax.Array:
    """Chomp1d.forward: x[:, :, :-chomp_size], contiguous.

    Note: chomp_size must be > 0 (PyTorch's `:-0` would return an empty slice;
    TCN always uses chomp_size = (kernel_size - 1) * dilation > 0).
    """
    assert x.ndim == 3, "expected (N, C, L)"
    n, c, l = x.shape
    assert 0 < chomp_size < l
    l_out = l - chomp_size
    itemsize = jnp.dtype(x.dtype).itemsize

    # Tiny shapes: masked partial stores + per-call overhead dominate; XLA's
    # native slice-copy wins.
    if l_out < 128 or n * c * l_out < (1 << 16):
        return lax.slice(x, (0, 0, 0), (n, c, l_out))
    # Small per-batch slabs: even chunked, per-DMA descriptor latency dominates.
    if c * l_out * itemsize < (64 << 10):
        return chomp1d_blocked(x, chomp_size)
    try:
        return chomp1d_dma(x, chomp_size)
    except Exception:
        # Mosaic builds that reject windowed HBM->HBM DMAs fall back to the
        # pipelined copy (still HBM-roofline-bound, with a VMEM round trip).
        return chomp1d_blocked(x, chomp_size)


if __name__ == "__main__":
    key = jax.random.PRNGKey(0)

    # Small shape consistent with the module's (N, C, L) layout.
    chomp = 3
    n, c, l = 2, 4, 16
    x = jax.random.normal(key, (n, c, l), dtype=jnp.float32)
    ref = x[:, :, :-chomp]

    # Portable pipelined path (hard assert: this is the guaranteed path).
    out_blk = jax.block_until_ready(chomp1d_blocked(x, chomp))
    assert out_blk.shape == (n, c, l - chomp)
    assert out_blk.dtype == x.dtype
    assert jnp.array_equal(out_blk, ref)

    # Larger shape forcing row+time tiling (incl. ragged edge blocks on both
    # axes) and, on the DMA path, channel-chunked windowed DMAs.
    chomp2 = 5
    n2, c2, l2 = 2, 15, 300
    x2 = jax.random.normal(jax.random.PRNGKey(0), (n2, c2, l2), dtype=jnp.float32)
    ref2 = x2[:, :, :-chomp2]

    out_blk2 = jax.block_until_ready(
        chomp1d_blocked(x2, chomp2, vmem_budget_bytes=16 << 10))
    assert jnp.array_equal(out_blk2, ref2)

    # Zero-VMEM HBM->HBM DMA kernels (preferred large-shape path); fall back
    # silently if this Mosaic build rejects windowed HBM->HBM DMAs.
    try:
        out_dma = jax.block_until_ready(chomp1d_dma(x, chomp))
        out_dma2 = jax.block_until_ready(
            chomp1d_dma(x2, chomp2, target_steps=8, min_chunk_bytes=1 << 10))
    except Exception:
        out_dma, out_dma2 = None, None
    if out_dma is not None:
        assert jnp.array_equal(out_dma, ref)
        assert jnp.array_equal(out_dma2, ref2)

    # Dispatcher sanity check (routes this tiny shape to the native slice).
    assert jnp.array_equal(chomp1d(x, chomp), ref)

    print("KERNEL_OK")
</pallas_src>

<mosaic_0001>
module attributes {stable_mosaic.version = 11 : i64} {
  func.func @_chomp_copy_kernel(%arg0: i32, %arg1: i32, %arg2: memref<8x128xf32, #tpu.memory_space<vmem>>, %arg3: memref<8x128xf32, #tpu.memory_space<vmem>>) attributes {dimension_semantics = [#tpu.dimension_semantics<parallel>, #tpu.dimension_semantics<parallel>], iteration_bounds = array<i64: 1, 1>, scalar_prefetch = 0 : i64, scratch_operands = 0 : i64, tpu.core_type = #tpu.core_type<tc>, window_params = [{transform_indices = @transform_0, window_bounds = array<i64: 8, 128>}, {transform_indices = @transform_1, window_bounds = array<i64: 8, 128>}]} {
    %c0 = arith.constant 0 : index
    %c0_0 = arith.constant 0 : index
    %0 = vector.load %arg2[%c0, %c0_0] : memref<8x128xf32, #tpu.memory_space<vmem>>, vector<8x128xf32>
    %c0_1 = arith.constant 0 : index
    %c0_2 = arith.constant 0 : index
    %1 = vector.load %arg3[%c0_1, %c0_2] : memref<8x128xf32, #tpu.memory_space<vmem>>, vector<8x128xf32>
    tpu.vector_store %arg3[%c0_1, %c0_2], %0 {strides = array<i32>} : memref<8x128xf32, #tpu.memory_space<vmem>>, vector<8x128xf32>,
    return
  }
  func.func @transform_0(%arg0: i32, %arg1: i32) -> (i32, i32) {
    %c0_i32 = arith.constant 0 : i32
    return %arg0, %arg1 : i32, i32
  }
  func.func @transform_1(%arg0: i32, %arg1: i32) -> (i32, i32) {
    %c0_i32 = arith.constant 0 : i32
    return %arg0, %arg1 : i32, i32
  }
}

</mosaic_0001>

<bundles_post_ra>
// kernel: tpu_custom_call.1
= control target key start
LH: loop header
LB: loop body
LE: loop exit
PB: predicated region body
PF: predicated region fallthrough
CT: control target
= control target key end

     0   :  { %6 = vsyncpa [#allocation3], 0  ;;  %s114_s0 = inlined_call_operand.hbm [shape: f32[8,16], index: 0, kind: input, shape index: {}]   ;;  %s115_s1 = inlined_call_operand.hbm [shape: f32[8,13], index: 1, kind: output, shape index: {}]  }
   0x1   :  { %7 = vsyncpa [#allocation4], 0  ;;  %s13_s8 = sshll.u32 %s114_s0, 4  ;;  %s96_s9 = smov [#allocation2]   ;;  %s14_s8 = int_to_ptr.hbm [resolvable:$true] %s13_s8 }
   0x2   :  { %s15_s10 = sshll.u32 %s96_s9, 4  ;;  %s16_s10 = int_to_ptr.vmem [resolvable:$true] %s15_s10 }
   0x3   :  { %18 = dma.hbm_to_vmem [thread:$0]  %s14_s8, 128, %s16_s10, [#allocation3]  }
   0x4   :  { %92 = dma.done.wait [#allocation3], 128  }
   0x5   :  { %93 = vsyncadd [#allocation3], 4294967168  ;;  %s97_s11 = smov [#allocation5]   ;;  %s32_s15 = sshll.u32 %s115_s1, 4  ;;  %v23_v0 = vld [vmem:[#allocation2] sm:$0xff]  ;;  %s33_s15 = int_to_ptr.hbm [resolvable:$true] %s32_s15 }
   0x6   :  { %s30_s12 = sshll.u32 %s97_s11, 4  ;;  %24 = vst [vmem:[#allocation5] sm:$0xff] %v23_v0  ;;  %s31_s12 = int_to_ptr.vmem [resolvable:$true] %s30_s12 }
   0x7   :  { %35 = dma.vmem_to_hbm [thread:$0]  %s31_s12, 128, %s33_s15, [#allocation4]  }
   0x8   :  { %94 = dma.done.wait [#allocation4], 128  }
   0x9   :  { %95 = vsyncadd [#allocation4], 4294967168 }
   0xa   :  { %40 = vsyncpa [#allocation3], 1 }
   0xb   :  { %41 = vsyncpa [#allocation4], 1 }

</bundles_post_ra>
